<compile_context>
chip_gen: v6e
topology: v6e:2x2x1
jax: 0.10.0
libtpu: 0.0.40
codegen_flags: <defaults>
</compile_context>

<pallas_src>
import jax
import jax.numpy as jnp
from jax.experimental import pallas as pl
from jax.experimental.pallas import tpu as pltpu


def _round_up(a, b):
    return ((a + b - 1) // b) * b


def _cdiv(a, b):
    return (a + b - 1) // b


# ---------------------------------------------------------------------------
# Kernels (augmented-operand matmul: dnorm2 == dot(x', yT'))
# ---------------------------------------------------------------------------

def _dnorm2_kernel(xa_ref, yat_ref, o_ref):
    # dnorm2 tile = x' @ yT'  (MXU; -2*x.y + ||x||^2 + ||y||^2 folded into the
    # contraction via the two augmented columns/rows).
    o_ref[...] = jnp.dot(xa_ref[...], yat_ref[...],
                         preferred_element_type=jnp.float32)


def _rbf_fused_kernel(gamma_ref, xa_ref, yat_ref, o_ref):
    # Fused: recompute dnorm2 from the x'/yT' tiles and apply the exp
    # epilogue (exp goes to the EUP slot -> free next to the output DMA).
    gamma = gamma_ref[0]
    d = jnp.dot(xa_ref[...], yat_ref[...], preferred_element_type=jnp.float32)
    o_ref[...] = jnp.exp(-gamma * d).astype(o_ref.dtype)


# ---------------------------------------------------------------------------
# Tile / VMEM policy
# ---------------------------------------------------------------------------

def _tile_caps():
    """Generation-tuned max f32 output tile (tm_max, tn_max)."""
    try:
        kind = jax.devices()[0].device_kind.lower()
    except Exception:  # pragma: no cover - defensive
        kind = ""
    if ("v5 lite" in kind) or ("v5e" in kind) or ("v5lite" in kind):
        return 512, 1024        # 2 MiB/out buffer; v5e has 16 MiB default scoped VMEM
    if "v6" in kind:
        return 1024, 1024       # 4 MiB/out buffer; well inside v6e VMEM
    if ("v7" in kind) or ("tpu7" in kind) or ("7x" in kind):
        return 1024, 2048       # 8 MiB/out buffer; <=~24 MiB total, fits v7x's 64 MiB
    return 512, 1024            # safe default for unknown / older generations


def _fit_tile(n, t_max, align):
    """Smallest aligned tile <= t_max that minimizes padding of n."""
    n_aligned = _round_up(max(n, 1), align)
    if n_aligned <= t_max:
        return n_aligned
    nblocks = _cdiv(n, t_max)
    tile = _round_up(_cdiv(n, nblocks), align)
    while tile > t_max:             # alignment round-up may overshoot the cap
        nblocks += 1
        tile = _round_up(_cdiv(n, nblocks), align)
    return tile


def _pick_tiles(N, M):
    tm_max, tn_max = _tile_caps()
    tm = _fit_tile(N, tm_max, 8)      # sublane-aligned rows
    tn = _fit_tile(M, tn_max, 128)    # lane-dense output columns
    return tm, tn


def _vmem_limit_bytes(tm, tn, Da):
    """Double-buffered footprint of (x', yT', out) tiles + margin, clamped."""
    x_buf = tm * _round_up(Da, 128) * 4         # (tm, Da) -> lanes pad to 128
    yt_buf = _round_up(Da, 8) * tn * 4          # (Da, tn) -> sublanes pad to 8
    o_buf = tm * tn * 4
    need = 2 * (x_buf + yt_buf + o_buf)         # 2x for double buffering
    limit = need + need // 2 + (2 << 20)        # 1.5x + 2 MiB headroom
    return int(min(max(limit, 16 << 20), 48 << 20))


# ---------------------------------------------------------------------------
# Wrapper plumbing (augmentation, padding, specs)
# ---------------------------------------------------------------------------

def _prep(x, y):
    """Cast, augment operands, pad to tile multiples, pre-transpose y."""
    x = x.astype(jnp.float32)
    y = y.astype(jnp.float32)
    N, D = x.shape
    M, _ = y.shape
    tm, tn = _pick_tiles(N, M)
    Np, Mp = _round_up(N, tm), _round_up(M, tn)

    xn = jnp.sum(x * x, axis=-1, keepdims=True)          # (N, 1)
    yn = jnp.sum(y * y, axis=-1, keepdims=True)          # (M, 1)
    ones_x = jnp.ones((N, 1), jnp.float32)
    ones_y = jnp.ones((M, 1), jnp.float32)

    # x' = [x, ||x||^2, 1]           (N, D+2)
    # y' = [-2*y, 1, ||y||^2]        (M, D+2)   ->  yT' = (D+2, M)
    # so  x'_i . y'_j = -2 x_i.y_j + ||x_i||^2 + ||y_j||^2 = dnorm2_ij
    xa = jnp.concatenate([x, xn, ones_x], axis=1)
    ya = jnp.concatenate([-2.0 * y, ones_y, yn], axis=1)

    xa = jnp.pad(xa, ((0, Np - N), (0, 0)))
    yat = jnp.pad(ya, ((0, Mp - M), (0, 0))).T            # (D+2, Mp): M on lanes
    Da = D + 2
    return xa, yat, (N, M, Da, Np, Mp, tm, tn)


def _grid_and_specs(dims, with_gamma):
    N, M, Da, Np, Mp, tm, tn = dims
    gm, gn = Np // tm, Mp // tn
    if gm == 1 and gn > 1:
        # Lead with the multi-block axis so megacore (v7x) has work to shard.
        grid = (gn, gm)
        xmap = lambda j, i: (i, 0)
        ytmap = lambda j, i: (0, j)
        omap = lambda j, i: (i, j)
    else:
        grid = (gm, gn)
        xmap = lambda i, j: (i, 0)
        ytmap = lambda i, j: (0, j)
        omap = lambda i, j: (i, j)

    in_specs = [
        pl.BlockSpec((tm, Da), xmap),      # x' tile
        pl.BlockSpec((Da, tn), ytmap),     # yT' tile
    ]
    if with_gamma:
        in_specs = [pl.BlockSpec(memory_space=pltpu.MemorySpace.SMEM)] + in_specs
    out_spec = pl.BlockSpec((tm, tn), omap)
    return grid, in_specs, out_spec


def _compiler_params(tm, tn, Da):
    return pltpu.CompilerParams(
        dimension_semantics=("parallel", "parallel"),
        vmem_limit_bytes=_vmem_limit_bytes(tm, tn, Da))


# ---------------------------------------------------------------------------
# Module
# ---------------------------------------------------------------------------

class RBFKernel:
    """JAX/Pallas port of ment_torch.samp.svgd.RBFKernel."""

    def __init__(self, sigma=None, out_dtype=jnp.float32):
        self.sigma = sigma
        # out_dtype=jnp.bfloat16 halves the dominant (N, M) HBM write but is an
        # intentional precision change; default stays f32 to match the module.
        self.out_dtype = out_dtype

    def __call__(self, x, y):
        xa, yat, dims = _prep(x, y)
        N, M, Da, Np, Mp, tm, tn = dims
        cparams = _compiler_params(tm, tn, Da)

        if self.sigma is None:
            # Pass 1: materialize dnorm2 only so the median can be taken.
            grid, in_specs, out_spec = _grid_and_specs(dims, with_gamma=False)
            dnorm2 = pl.pallas_call(
                _dnorm2_kernel,
                out_shape=jax.ShapeDtypeStruct((Np, Mp), jnp.float32),
                grid=grid,
                in_specs=in_specs,
                out_specs=out_spec,
                compiler_params=cparams,
            )(xa, yat)[:N, :M]
            # TODO(synk): median (selection/sort) has no clean Pallas primitive;
            # computed with jnp.median in plain JAX, matching np.median of the
            # original module.
            h = jnp.median(dnorm2) / (2.0 * jnp.log(N + 1.0))
            sigma = jnp.sqrt(h)
        else:
            sigma = jnp.asarray(self.sigma, jnp.float32)

        gamma = jnp.asarray(
            1.0 / (1e-08 + 2.0 * sigma ** 2), jnp.float32).reshape((1,))

        # Fused pass: dnorm2 recomputed from the tiny x'/yT' tiles + exp
        # epilogue, so the only (N, M)-sized HBM traffic is the output write.
        grid, in_specs, out_spec = _grid_and_specs(dims, with_gamma=True)
        k_xy = pl.pallas_call(
            _rbf_fused_kernel,
            out_shape=jax.ShapeDtypeStruct((Np, Mp), self.out_dtype),
            grid=grid,
            in_specs=in_specs,
            out_specs=out_spec,
            compiler_params=cparams,
        )(gamma, xa, yat)
        return k_xy[:N, :M]


# ---------------------------------------------------------------------------
# Pure-JAX reference (mirrors the torch module)
# ---------------------------------------------------------------------------

def _reference(x, y, sigma=None):
    x = x.astype(jnp.float32)
    y = y.astype(jnp.float32)
    xy = x @ y.T
    dnorm2 = -2.0 * xy + jnp.sum(x * x, -1)[:, None] + jnp.sum(y * y, -1)[None, :]
    if sigma is None:
        h = jnp.median(dnorm2) / (2.0 * jnp.log(x.shape[0] + 1.0))
        sigma = jnp.sqrt(h)
    gamma = 1.0 / (1e-08 + 2.0 * sigma ** 2)
    return jnp.exp(-gamma * dnorm2)


if __name__ == "__main__":
    key = jax.random.PRNGKey(0)
    kx, ky, kx2, ky2 = jax.random.split(key, 4)

    # Case 1: small particle set, hidden dim 32.
    N1, M1, D1 = 16, 16, 32
    x1 = jax.random.normal(kx, (N1, D1), dtype=jnp.float32)
    y1 = jax.random.normal(ky, (M1, D1), dtype=jnp.float32)

    k_auto = RBFKernel(sigma=None)(x1, y1)      # median bandwidth heuristic
    k_fixed = RBFKernel(sigma=1.0)(x1, y1)      # fixed sigma
    jax.block_until_ready(k_auto)
    jax.block_until_ready(k_fixed)
    assert k_auto.shape == (N1, M1) and k_fixed.shape == (N1, M1)
    assert jnp.allclose(k_auto, _reference(x1, y1, None), atol=1e-5, rtol=1e-5)
    assert jnp.allclose(k_fixed, _reference(x1, y1, 1.0), atol=1e-5, rtol=1e-5)

    # Case 2: shapes that exercise both row (sublane) and column (lane) padding.
    N2, M2, D2 = 52, 72, 32
    x2 = jax.random.normal(kx2, (N2, D2), dtype=jnp.float32)
    y2 = jax.random.normal(ky2, (M2, D2), dtype=jnp.float32)

    k2_auto = RBFKernel(sigma=None)(x2, y2)
    k2_fixed = RBFKernel(sigma=0.7)(x2, y2)
    jax.block_until_ready(k2_auto)
    jax.block_until_ready(k2_fixed)
    assert k2_auto.shape == (N2, M2) and k2_fixed.shape == (N2, M2)
    assert jnp.allclose(k2_auto, _reference(x2, y2, None), atol=1e-5, rtol=1e-5)
    assert jnp.allclose(k2_fixed, _reference(x2, y2, 0.7), atol=1e-5, rtol=1e-5)

    print("KERNEL_OK")
</pallas_src>

<mosaic_0001>
module attributes {stable_mosaic.version = 11 : i64} {
  func.func @_dnorm2_kernel(%arg0: i32, %arg1: i32, %arg2: memref<16x34xf32, #tpu.memory_space<vmem>>, %arg3: memref<34x128xf32, #tpu.memory_space<vmem>>, %arg4: memref<16x128xf32, #tpu.memory_space<vmem>>) attributes {dimension_semantics = [#tpu.dimension_semantics<parallel>, #tpu.dimension_semantics<parallel>], iteration_bounds = array<i64: 1, 1>, scalar_prefetch = 0 : i64, scratch_operands = 0 : i64, tpu.core_type = #tpu.core_type<tc>, window_params = [{transform_indices = @transform_0, window_bounds = array<i64: 16, 34>}, {transform_indices = @transform_1, window_bounds = array<i64: 34, 128>}, {transform_indices = @transform_2, window_bounds = array<i64: 16, 128>}]} {
    %c0 = arith.constant 0 : index
    %c0_0 = arith.constant 0 : index
    %0 = vector.load %arg2[%c0, %c0_0] : memref<16x34xf32, #tpu.memory_space<vmem>>, vector<16x34xf32>
    %c0_1 = arith.constant 0 : index
    %c0_2 = arith.constant 0 : index
    %1 = vector.load %arg3[%c0_1, %c0_2] : memref<34x128xf32, #tpu.memory_space<vmem>>, vector<34x128xf32>
    %cst = arith.constant dense<0.000000e+00> : vector<16x128xf32>
    %2 = tpu.matmul %0, %1, %cst {dimension_numbers = #tpu.dot_dimension_numbers<[1], [0], [0], [1], [0, 0, 1, 1], [], []>} : vector<16x34xf32>, vector<34x128xf32>, vector<16x128xf32> -> vector<16x128xf32>
    %c0_3 = arith.constant 0 : index
    %c0_4 = arith.constant 0 : index
    %3 = vector.load %arg4[%c0_3, %c0_4] : memref<16x128xf32, #tpu.memory_space<vmem>>, vector<16x128xf32>
    tpu.vector_store %arg4[%c0_3, %c0_4], %2 {strides = array<i32>} : memref<16x128xf32, #tpu.memory_space<vmem>>, vector<16x128xf32>,
    return
  }
  func.func @transform_0(%arg0: i32, %arg1: i32) -> (i32, i32) {
    %c0_i32 = arith.constant 0 : i32
    %c0_i32_0 = arith.constant 0 : i32
    return %arg0, %c0_i32 : i32, i32
  }
  func.func @transform_1(%arg0: i32, %arg1: i32) -> (i32, i32) {
    %c0_i32 = arith.constant 0 : i32
    %c0_i32_0 = arith.constant 0 : i32
    return %c0_i32, %arg1 : i32, i32
  }
  func.func @transform_2(%arg0: i32, %arg1: i32) -> (i32, i32) {
    %c0_i32 = arith.constant 0 : i32
    return %arg0, %arg1 : i32, i32
  }
}

</mosaic_0001>

<bundles_post_ra>
// kernel: tpu_custom_call.1
= control target key start
LH: loop header
LB: loop body
LE: loop exit
PB: predicated region body
PF: predicated region fallthrough
CT: control target
= control target key end

     0   :  { %7 = vsyncpa [#allocation3], 0  ;;  %s287_s0 = inlined_call_operand.hbm [shape: f32[16,34], index: 0, kind: input, shape index: {}]   ;;  %s288_s1 = inlined_call_operand.hbm [shape: f32[34,128], index: 1, kind: input, shape index: {}]   ;;  %s289_s2 = inlined_call_operand.hbm [shape: f32[16,128], index: 2, kind: output, shape index: {}]  }
   0x1   :  { %8 = vsyncpa [#allocation6], 0 }
   0x2   :  { %9 = vsyncpa [#allocation4], 0  ;;  %s247_s9 = smov [#allocation2]  }
   0x3   :  { %s15_s10 = sshll.u32 %s247_s9, 4  ;;  %s16_s10 = int_to_ptr.vmem [resolvable:$true] %s15_s10 }
   0x4   :  { %s189_s11 = scalar_lea.vmem %s16_s10, 256  ;;  %p194_p1 = scmp.lt.s32.totalorder %s16_s10, %s16_s10 }
   0x5   :  { %p190_p0 = scmp.ne.s32.totalorder %s16_s10, %s189_s11  ;;  %p195_p2 = scmp.lt.s32.totalorder %s189_s11, %s189_s11 }
   0x7   :  { %p196_p3 = por %p195_p2, %p194_p1 }
   0x9   :  { %p197_p4 = pnand %p196_p3, %p190_p0 }
   0xb   :  { %200 = shalt.err (!%p197_p4)
}
   0xc   :  { %s248_s12 = smov 128   ;;  %s249_s13 = smov 8  }
   0xd   :  { %21 = dma.hbm_to_vmem [thread:$0]  %s287_s0, 256, %s16_s10, [#allocation3], %s248_s12, %s248_s12, %s249_s13  }
   0xe   :  { %s250_s16 = smov [#allocation5]  }
   0xf   :  { %s27_s17 = sshll.u32 %s250_s16, 4  ;;  %s28_s17 = int_to_ptr.vmem [resolvable:$true] %s27_s17 }
  0x10   :  { %s209_s18 = scalar_lea.vmem %s28_s17, 640  ;;  %p214_p6 = scmp.lt.s32.totalorder %s28_s17, %s28_s17 }
  0x11   :  { %p210_p5 = scmp.ne.s32.totalorder %s28_s17, %s209_s18  ;;  %p215_p7 = scmp.lt.s32.totalorder %s209_s18, %s209_s18 }
  0x13   :  { %p216_p8 = por %p215_p7, %p214_p6 }
  0x15   :  { %p217_p9 = pnand %p216_p8, %p210_p5 }
  0x17   :  { %220 = shalt.err (!%p217_p9)
}
  0x18   :  { %33 = dma.hbm_to_vmem [thread:$0]  %s288_s1, 640, %s28_s17, [#allocation6], %s248_s12, %s248_s12, %s249_s13  }
  0x19   :  { %241 = dma.done.wait [#allocation3], 256  }
  0x1a   :  { %242 = vsyncadd [#allocation3], 4294967040 }
  0x1b   :  { %243 = dma.done.wait [#allocation6], 640  }
  0x1c   :  { %244 = vsyncadd [#allocation6], 4294966656  ;;  %vm54_vm0 = vcmask 1041408   ;;  %vm47_vm1 = vcmask 277504   ;;  %v46_v0 = vld [vmem:[#allocation5 + $0x20] sm:$0x3] }
  0x1d   :  { %v45_v1 = vld [vmem:[#allocation5 + $0x18] sm:$0xff]  ;;  %163 = vmatprep.subr.msk.mxu0 %vm54_vm0, %v46_v0  ;;  %v40_v2 = vld [vmem:[#allocation2] sm:$0xff]  ;;  %v43_v4 = vld [vmem:[#allocation5 + $0x8] sm:$0xff]  ;;  %s251_s0 = smov [#allocation7]  }
  0x1e   :  { %164 = vmatpush3.msk.msra.mxu0 %vm54_vm0, %v46_v0  ;;  %v44_v3 = vld [vmem:[#allocation5 + $0x10] sm:$0xff]  ;;  %173 = vmatprep.mubr.msk.f32.mxu0 %vm47_vm1, %v40_v2  ;;  %v42_v5 = vld [vmem:[#allocation5] sm:$0xff]  ;;  %v41_v6 = vld [vmem:[#allocation2 + $0x8] sm:$0xff]  ;;  %s140_s1 = sshll.u32 %s251_s0, 4  ;;  %s141_s1 = int_to_ptr.vmem [resolvable:$true] %s140_s1 }
  0x1f   :  { %165 = vmatprep.subr.mxu0 %v45_v1  ;;  %s221_s21 = scalar_lea.vmem %s141_s1, 256  ;;  %p226_p11 = scmp.lt.s32.totalorder %s141_s1, %s141_s1 }
  0x20   :  { %166 = vmatpush3.msra.mxu0 %v45_v1  ;;  %p222_p10 = scmp.ne.s32.totalorder %s141_s1, %s221_s21  ;;  %p227_p12 = scmp.lt.s32.totalorder %s221_s21, %s221_s21 }
  0x21   :  { %167 = vmatprep.subr.mxu0 %v44_v3 }
  0x22   :  { %168 = vmatpush3.msra.mxu0 %v44_v3  ;;  %p228_p13 = por %p227_p12, %p226_p11 }
  0x23   :  { %169 = vmatprep.subr.mxu0 %v43_v4 }
  0x24   :  { %170 = vmatpush3.msra.mxu0 %v43_v4  ;;  %p229_p0 = pnand %p228_p13, %p222_p10 }
  0x25   :  { %171 = vmatprep.subr.mxu0 %v42_v5 }
  0x26   :  { %172 = vmatpush3.msra.mxu0 %v42_v5 }
  0x27   :  { %174 = vmatmul.mubr.msk.f32.vlgmr.msra.gmra.mxu0 %vm47_vm1, %v41_v6 }
  0xe7   :  { %v175_v7 = vpop.f32.mrf.mxu0 }
  0xe8   :  { %134 = vst [vmem:[#allocation7 + $0x8] sm:$0xff] %v175_v7 }
  0xe9   :  { %v124_v8 = vpop.f32.mrf.mxu0 }
  0xea   :  { %133 = vst [vmem:[#allocation7] sm:$0xff] %v124_v8 }
  0xeb   :  { %232 = shalt.err (!%p229_p0)
}
  0xec   :  { %146 = dma.vmem_to_hbm [thread:$0]  %s141_s1, 256, %s289_s2, [#allocation4], %s248_s12, %s248_s12, %s249_s13  }
  0xed   :  { %245 = dma.done.wait [#allocation4], 256  }
  0xee   :  { %246 = vsyncadd [#allocation4], 4294967040 }
  0xef   :  { %150 = vsyncpa [#allocation3], 1 }
  0xf0   :  { %151 = vsyncpa [#allocation6], 1 }
  0xf1   :  { %152 = vsyncpa [#allocation4], 1 }

</bundles_post_ra>
